<compile_context>
chip_gen: v7x
topology: tpu7x:2x2x1
jax: 0.10.0
libtpu: 0.0.40
codegen_flags: <defaults>
</compile_context>

<pallas_src>
import jax
import jax.numpy as jnp
from jax.experimental import pallas as pl
from jax.experimental.pallas import tpu as pltpu


# ----------------------------------------------------------------------------
# Kernel
# ----------------------------------------------------------------------------
def _make_brnn_kernel(T, B, H, n_layers, in_size):
    F2 = 2 * H        # per-layer bidirectional feature width / fused state width
    G2 = 8 * H        # fused gate width (4 gates x 2 directions), gate-major layout

    def kernel(maxlen_ref, len_ref, x_ref, *args):
        # inputs:  maxlen (1,) i32 SMEM, lens (B,1) i32 VMEM, x (T,B,D) f32,
        #          per layer: wih_fused (D_l,8H) bf16, bias (1,8H) f32,
        #                     w_rec block-diag (2H,8H) bf16
        # output:  (T, B, 2H*L) f32
        # scratch: xp (T, B, 8H) f32 projected gates for the current layer
        layer_refs = args[:3 * n_layers]
        out_ref = args[3 * n_layers]
        xp_sc = args[3 * n_layers + 1]

        t_valid = maxlen_ref[0]               # max(lengths): dynamic loop bound
        lens = len_ref[...]                   # (B, 1) int32

        # ---- static per-lane constants, hoisted (broadcasts are not CSE'd).
        # Gate-major / direction-minor layout: columns [2Hk:2Hk+H] = gate k fwd,
        # [2Hk+H:2Hk+2H] = gate k bwd, k in {i, f, g, o}.
        lane_g2 = jax.lax.broadcasted_iota(jnp.int32, (B, G2), 1)
        dir_fwd = (lane_g2 % F2) < H                         # fwd lanes of each gate pair
        is_g = jnp.logical_and(lane_g2 >= 4 * H, lane_g2 < 6 * H)
        # single-tanh activation trick: sigmoid(x) = 0.5*tanh(0.5*x) + 0.5
        act_scale = jnp.where(is_g, 1.0, 0.5).astype(jnp.float32)
        act_off = (1.0 - act_scale).astype(jnp.float32)
        lane_f2 = jax.lax.broadcasted_iota(jnp.int32, (B, F2), 1)
        half_fwd = lane_f2 < H                               # fwd half of [h_f | h_b]

        # Zero the whole output slab once so positions t >= max(lengths) (and
        # padded batch rows) stay exact zeros; per-step stores handle the rest.
        out_ref[...] = jnp.zeros_like(out_ref)

        h0 = jnp.zeros((B, F2), jnp.float32)
        c0 = jnp.zeros((B, F2), jnp.float32)

        for l in range(n_layers):
            wih_ref, b_ref, wrec_ref = layer_refs[3 * l:3 * l + 3]
            d_l = in_size if l == 0 else F2
            c0l = F2 * l

            # ---- input projection: one big matmul, fully off the serial path.
            if l == 0:
                x_in = x_ref[...]                              # (T, B, D)
            else:
                x_in = out_ref[:, :, F2 * (l - 1):F2 * l]      # previous layer's slice
            x2d = x_in.reshape(T * B, d_l).astype(jnp.bfloat16)
            xp = (jnp.dot(x2d, wih_ref[...], preferred_element_type=jnp.float32)
                  + b_ref[...])                                # (T*B, 8H) f32
            xp_sc[...] = xp.reshape(T, B, G2)

            # ---- recurrence: both directions fused, h/c in loop carries.
            w_rec = wrec_ref[...]                              # hoisted (2H, 8H) bf16

            def rec_body(s, carry):
                h_cat, c_cat = carry                           # (B, 2H) f32 each
                t_f = s
                t_b = t_valid - 1 - s
                # fwd lanes take time t_f's projected gates, bwd lanes time t_b's
                xg = jnp.where(dir_fwd, xp_sc[t_f], xp_sc[t_b])
                pre = xg + jnp.dot(h_cat.astype(jnp.bfloat16), w_rec,
                                   preferred_element_type=jnp.float32)
                th = jnp.tanh(pre * act_scale)                 # single EUP pass
                act = act_scale * th + act_off
                i_g = act[:, 0:F2]
                f_g = act[:, F2:2 * F2]
                g_g = act[:, 2 * F2:3 * F2]
                o_g = act[:, 3 * F2:4 * F2]
                c_new = f_g * c_cat + i_g * g_g
                h_new = o_g * jnp.tanh(c_new)

                v_f = t_f < lens                               # (B, 1) bool
                v_b = t_b < lens
                t_sel = jnp.where(half_fwd, t_f, t_b)          # (B, 2H) i32
                valid = t_sel < lens                           # per-half validity
                h_next = jnp.where(valid, h_new, h_cat)
                c_next = jnp.where(valid, c_new, c_cat)

                # direct lane-sliced stores into the output slab (no buf copy)
                out_ref[t_f, :, c0l:c0l + H] = jnp.where(v_f, h_new[:, 0:H], 0.0)
                out_ref[t_b, :, c0l + H:c0l + F2] = jnp.where(v_b, h_new[:, H:F2], 0.0)
                return h_next, c_next

            jax.lax.fori_loop(0, t_valid, rec_body, (h0, c0))

    return kernel


def _brnn_pallas(x_f32, lens2d, maxlen, layer_params, H, n_layers):
    """Run the whole stacked BiLSTM in a single Pallas invocation."""
    T, B, D = x_f32.shape
    flat_w = []
    for lp in layer_params:
        flat_w.extend(lp)                     # (wih_fused, bias_fused, w_rec)

    kernel = _make_brnn_kernel(T, B, H, n_layers, D)
    n_inputs = 3 + 3 * n_layers
    in_specs = ([pl.BlockSpec(memory_space=pltpu.MemorySpace.SMEM)]
                + [pl.BlockSpec(memory_space=pltpu.MemorySpace.VMEM)] * (n_inputs - 1))

    # Footprint-derived VMEM cap (do not hardcode 32 MiB; cap well under
    # physical limits so the same code is safe on v7x's 64 MiB VMEM).
    def nbytes(a):
        return int(a.size) * a.dtype.itemsize
    out_bytes = T * B * 2 * H * n_layers * 4
    xp_bytes = T * B * 8 * H * 4
    total = (nbytes(x_f32) + nbytes(lens2d) + sum(nbytes(w) for w in flat_w)
             + out_bytes + xp_bytes)
    vmem_limit = int(min(max(2 * total + (4 << 20), 8 << 20), 56 << 20))

    return pl.pallas_call(
        kernel,
        out_shape=jax.ShapeDtypeStruct((T, B, 2 * H * n_layers), jnp.float32),
        in_specs=in_specs,
        out_specs=pl.BlockSpec(memory_space=pltpu.MemorySpace.VMEM),
        scratch_shapes=[
            pltpu.VMEM((T, B, 8 * H), jnp.float32),   # projected gates, both dirs
        ],
        compiler_params=pltpu.CompilerParams(vmem_limit_bytes=vmem_limit),
    )(maxlen, lens2d, x_f32, *flat_w)


# ----------------------------------------------------------------------------
# Parameters (PyTorch-style init, pre-fused layouts)
# ----------------------------------------------------------------------------
def init_lstm_params(key, n_layers, in_size, h_size):
    """Uniform(-1/sqrt(H), 1/sqrt(H)) init; returns per layer:
      wih_fused (D_l, 8H) bf16 : gate-major/direction-minor [i_f i_b f_f f_b g_f g_b o_f o_b]
      bias_fused (1, 8H) f32   : (b_ih + b_hh) per direction, same layout
      w_rec     (2H, 8H) bf16  : block-diagonal recurrent weights (rows = [h_f | h_b])
    """
    H = h_size
    std = 1.0 / (H ** 0.5)

    def fuse_cols(a_f, a_b):                  # (D,4H),(D,4H) -> (D,8H) gate-major
        D = a_f.shape[0]
        return jnp.concatenate(
            [a_f.reshape(D, 4, H), a_b.reshape(D, 4, H)], axis=2).reshape(D, 8 * H)

    params = []
    for n in range(n_layers):
        d_in = in_size if n == 0 else 2 * H
        per_dir = []
        for _ in range(2):                    # fwd, bwd
            key, k1, k2, k3, k4 = jax.random.split(key, 5)
            wih = jax.random.uniform(k1, (4 * H, d_in), jnp.float32, -std, std)
            whh = jax.random.uniform(k2, (4 * H, H), jnp.float32, -std, std)
            bih = jax.random.uniform(k3, (4 * H,), jnp.float32, -std, std)
            bhh = jax.random.uniform(k4, (4 * H,), jnp.float32, -std, std)
            per_dir.append((wih, whh, bih + bhh))
        (wih_f, whh_f, b_f), (wih_b, whh_b, b_b) = per_dir

        wih_fused = fuse_cols(wih_f.T, wih_b.T).astype(jnp.bfloat16)
        bias_fused = fuse_cols(b_f.reshape(1, 4 * H),
                               b_b.reshape(1, 4 * H)).astype(jnp.float32)
        z = jnp.zeros((H, 4 * H), jnp.float32)
        w_rec = jnp.concatenate([fuse_cols(whh_f.T, z), fuse_cols(z, whh_b.T)],
                                axis=0).astype(jnp.bfloat16)
        params.append((wih_fused, bias_fused, w_rec))
    return params


# ----------------------------------------------------------------------------
# Wrapper (bug-faithful BRNNs.forward semantics)
# ----------------------------------------------------------------------------
def _prepare_inputs(x, input_mask):
    B, T, _ = x.shape
    lengths = jnp.sum((input_mask == 0).astype(jnp.int32), axis=1)     # (B,)
    sorted_idx = jnp.argsort(-lengths)        # descending, like torch.sort(descending=True)
    x_perm = x[sorted_idx]                    # index_select(0, sorted_idx); never unsorted
    # bug-faithful: the *unsorted* lengths are used for packing
    B_pad = ((B + 7) // 8) * 8                # sublane multiple; padded rows get length 0
    pad = B_pad - B
    x_tbd = jnp.pad(jnp.transpose(x_perm, (1, 0, 2)).astype(jnp.float32),
                    ((0, 0), (0, pad), (0, 0)))                         # (T, B_pad, D)
    lens2d = jnp.pad(lengths, (0, pad)).reshape(B_pad, 1).astype(jnp.int32)
    maxlen = jnp.max(lengths).reshape(1).astype(jnp.int32)
    return x_tbd, lens2d, maxlen, lengths


def brnns_forward(x, input_mask, params, h_size):
    """Returns (output, lengths). output is (B, T, 2*H*n_layers) with rows in
    descending-length order, masked with the unsorted lengths (bug-faithful);
    caller truncates time to max(lengths) like pad_packed_sequence does."""
    B = x.shape[0]
    n_layers = len(params)
    x_tbd, lens2d, maxlen, lengths = _prepare_inputs(x, input_mask)
    out_tbf = _brnn_pallas(x_tbd, lens2d, maxlen, params, h_size, n_layers)
    out = jnp.transpose(out_tbf, (1, 0, 2))[:B]
    return out, lengths


# ----------------------------------------------------------------------------
# Pure-JAX reference (same semantics, plain f32 scans) for validation
# ----------------------------------------------------------------------------
def brnns_reference(x_tbd, lens_flat, params, H):
    T, B, _ = x_tbd.shape
    lens = lens_flat.reshape(B, 1).astype(jnp.int32)
    inp = x_tbd.astype(jnp.float32)
    outs = []
    for (wih_fused, bias_fused, w_rec) in params:
        D = wih_fused.shape[0]
        wih = wih_fused.astype(jnp.float32).reshape(D, 4, 2 * H)
        bias = bias_fused.astype(jnp.float32).reshape(4, 2 * H)
        wrec = w_rec.astype(jnp.float32).reshape(2 * H, 4, 2 * H)
        layer_out = []
        for d, (lo, hi) in enumerate(((0, H), (H, 2 * H))):
            w_ih_d = wih[:, :, lo:hi].reshape(D, 4 * H)
            b_d = bias[:, lo:hi].reshape(1, 4 * H)
            w_hh_d = wrec[lo:hi, :, lo:hi].reshape(H, 4 * H)
            xp = jnp.einsum('tbd,dg->tbg', inp, w_ih_d) + b_d          # (T,B,4H)

            def cell(carry, xs, w_hh_d=w_hh_d):
                h, c = carry
                t, xp_t = xs
                pre = xp_t + h @ w_hh_d
                i = jax.nn.sigmoid(pre[:, 0:H])
                f = jax.nn.sigmoid(pre[:, H:2 * H])
                g = jnp.tanh(pre[:, 2 * H:3 * H])
                o = jax.nn.sigmoid(pre[:, 3 * H:4 * H])
                c_new = f * c + i * g
                h_new = o * jnp.tanh(c_new)
                v = t < lens
                h = jnp.where(v, h_new, h)
                c = jnp.where(v, c_new, c)
                return (h, c), jnp.where(v, h_new, 0.0)

            ts = jnp.arange(T)
            if d == 1:
                ts = ts[::-1]
            z = jnp.zeros((B, H), jnp.float32)
            _, o_seq = jax.lax.scan(cell, (z, z), (ts, xp[ts]))
            if d == 1:
                o_seq = o_seq[::-1]
            layer_out.append(o_seq)
        layer_cat = jnp.concatenate(layer_out, axis=2)                 # (T,B,2H)
        outs.append(layer_cat)
        inp = layer_cat
    return jnp.concatenate(outs, axis=2)                               # (T,B,2H*L)


# ----------------------------------------------------------------------------
if __name__ == "__main__":
    B, T, IN_SIZE, H_SIZE, N_LAYERS = 4, 8, 16, 32, 2

    key = jax.random.PRNGKey(0)
    kx, klen, kp = jax.random.split(key, 3)

    x = jax.random.normal(kx, (B, T, IN_SIZE), dtype=jnp.float32)
    lengths_true = jax.random.randint(klen, (B,), 3, T + 1)
    # input_mask: 0 = valid token, nonzero = padding (lengths = count of zeros)
    input_mask = (jnp.arange(T)[None, :] >= lengths_true[:, None]).astype(jnp.float32)

    params = init_lstm_params(kp, N_LAYERS, IN_SIZE, H_SIZE)

    out, lens = brnns_forward(x, input_mask, params, H_SIZE)
    max_len = int(jnp.max(lens))              # pad_packed_sequence pads only to max length
    out = out[:, :max_len, :]
    out = jax.block_until_ready(out)

    assert out.shape == (B, max_len, 2 * H_SIZE * N_LAYERS), out.shape
    assert bool(jnp.all(jnp.isfinite(out)))

    # cross-check against the plain-JAX reference (bf16 matmul operands in the
    # kernel vs pure f32 reference -> loose tolerance)
    x_tbd, lens2d, _, _ = _prepare_inputs(x, input_mask)
    ref_tbf = brnns_reference(x_tbd, lens2d.reshape(-1), params, H_SIZE)
    ref = jnp.transpose(ref_tbf, (1, 0, 2))[:B, :max_len, :]
    err = float(jnp.max(jnp.abs(out - ref)))
    assert err < 8e-2, f"mismatch vs reference: max abs err = {err}"

    print("KERNEL_OK")
</pallas_src>

<mosaic_0001>
module attributes {stable_mosaic.version = 11 : i64} {
  func.func @kernel(%arg0: memref<1xi32, #tpu.memory_space<smem>>, %arg1: memref<8x1xi32, #tpu.memory_space<vmem>>, %arg2: memref<8x8x16xf32, #tpu.memory_space<vmem>>, %arg3: memref<16x256xbf16, #tpu.memory_space<vmem>>, %arg4: memref<1x256xf32, #tpu.memory_space<vmem>>, %arg5: memref<64x256xbf16, #tpu.memory_space<vmem>>, %arg6: memref<64x256xbf16, #tpu.memory_space<vmem>>, %arg7: memref<1x256xf32, #tpu.memory_space<vmem>>, %arg8: memref<64x256xbf16, #tpu.memory_space<vmem>>, %arg9: memref<8x8x128xf32, #tpu.memory_space<vmem>>, %arg10: memref<8x8x256xf32, #tpu.memory_space<vmem>>) attributes {dimension_semantics = [], scalar_prefetch = 0 : i64, scratch_operands = 1 : i64, tpu.core_type = #tpu.core_type<tc>} {
    %c0 = arith.constant 0 : index
    %0 = memref.load %arg0[%c0] : memref<1xi32, #tpu.memory_space<smem>>
    %c0_0 = arith.constant 0 : index
    %c0_1 = arith.constant 0 : index
    %1 = vector.load %arg1[%c0_0, %c0_1] : memref<8x1xi32, #tpu.memory_space<vmem>>, vector<8x1xi32>
    %2 = tpu.iota {dimensions = array<i32: 1>} : vector<8x256xi32>
    %c64_i32 = arith.constant 64 : i32
    %c0_i32 = arith.constant 0 : i32
    %3 = arith.cmpi eq, %c64_i32, %c0_i32 : i32
    %c1_i32 = arith.constant 1 : i32
    %4 = arith.select %3, %c1_i32, %c64_i32 : i32
    %5 = vector.broadcast %4 : i32 to vector<8x256xi32>
    %6 = arith.remsi %2, %5 : vector<8x256xi32>
    %c0_i32_2 = arith.constant 0 : i32
    %7 = vector.broadcast %c0_i32_2 : i32 to vector<8x256xi32>
    %8 = arith.cmpi ne, %6, %7 : vector<8x256xi32>
    %c0_i32_3 = arith.constant 0 : i32
    %9 = vector.broadcast %c0_i32_3 : i32 to vector<8x256xi32>
    %10 = arith.cmpi slt, %6, %9 : vector<8x256xi32>
    %c0_i32_4 = arith.constant 0 : i32
    %11 = arith.cmpi slt, %4, %c0_i32_4 : i32
    %12 = vector.broadcast %11 : i1 to vector<8x256xi1>
    %13 = vector.broadcast %12 : vector<8x256xi1> to vector<8x256xi1>
    %14 = arith.xori %10, %13 : vector<8x256xi1>
    %15 = arith.andi %14, %8 : vector<8x256xi1>
    %16 = vector.broadcast %4 : i32 to vector<8x256xi32>
    %17 = arith.addi %6, %16 : vector<8x256xi32>
    %18 = arith.select %15, %17, %6 : vector<8x256xi1>, vector<8x256xi32>
    %c32_i32 = arith.constant 32 : i32
    %19 = vector.broadcast %c32_i32 : i32 to vector<8x256xi32>
    %20 = arith.cmpi slt, %18, %19 : vector<8x256xi32>
    %c128_i32 = arith.constant 128 : i32
    %21 = vector.broadcast %c128_i32 : i32 to vector<8x256xi32>
    %22 = arith.cmpi sge, %2, %21 : vector<8x256xi32>
    %c192_i32 = arith.constant 192 : i32
    %23 = vector.broadcast %c192_i32 : i32 to vector<8x256xi32>
    %24 = arith.cmpi slt, %2, %23 : vector<8x256xi32>
    %25 = arith.andi %22, %24 : vector<8x256xi1>
    %cst = arith.constant 1.000000e+00 : f32
    %cst_5 = arith.constant 5.000000e-01 : f32
    %26 = vector.broadcast %cst : f32 to vector<8x256xf32>
    %27 = vector.broadcast %cst_5 : f32 to vector<8x256xf32>
    %28 = arith.select %25, %26, %27 : vector<8x256xi1>, vector<8x256xf32>
    %cst_6 = arith.constant 1.000000e+00 : f32
    %29 = vector.broadcast %cst_6 : f32 to vector<8x256xf32>
    %30 = arith.subf %29, %28 : vector<8x256xf32>
    %31 = tpu.iota {dimensions = array<i32: 1>} : vector<8x64xi32>
    %c32_i32_7 = arith.constant 32 : i32
    %32 = vector.broadcast %c32_i32_7 : i32 to vector<8x64xi32>
    %33 = arith.cmpi slt, %31, %32 : vector<8x64xi32>
    %cst_8 = arith.constant 0.000000e+00 : f32
    %34 = vector.broadcast %cst_8 : f32 to vector<8x8x128xf32>
    %c0_9 = arith.constant 0 : index
    %c0_10 = arith.constant 0 : index
    %c0_11 = arith.constant 0 : index
    %35 = vector.load %arg9[%c0_9, %c0_10, %c0_11] : memref<8x8x128xf32, #tpu.memory_space<vmem>>, vector<8x8x128xf32>
    tpu.vector_store %arg9[%c0_9, %c0_10, %c0_11], %34 {strides = array<i32>} : memref<8x8x128xf32, #tpu.memory_space<vmem>>, vector<8x8x128xf32>,
    %cst_12 = arith.constant 0.000000e+00 : f32
    %36 = vector.broadcast %cst_12 : f32 to vector<8x64xf32>
    %cst_13 = arith.constant 0.000000e+00 : f32
    %37 = vector.broadcast %cst_13 : f32 to vector<8x64xf32>
    %c0_14 = arith.constant 0 : index
    %c0_15 = arith.constant 0 : index
    %c0_16 = arith.constant 0 : index
    %38 = vector.load %arg2[%c0_14, %c0_15, %c0_16] : memref<8x8x16xf32, #tpu.memory_space<vmem>>, vector<8x8x16xf32>
    %39 = vector.shape_cast %38 : vector<8x8x16xf32> to vector<64x16xf32>
    %40 = arith.truncf %39 : vector<64x16xf32> to vector<64x16xbf16>
    %c0_17 = arith.constant 0 : index
    %c0_18 = arith.constant 0 : index
    %41 = vector.load %arg3[%c0_17, %c0_18] : memref<16x256xbf16, #tpu.memory_space<vmem>>, vector<16x256xbf16>
    %cst_19 = arith.constant dense<0.000000e+00> : vector<64x256xf32>
    %42 = tpu.matmul %40, %41, %cst_19 {dimension_numbers = #tpu.dot_dimension_numbers<[1], [0], [0], [1], [0, 0, 1, 1], [], []>} : vector<64x16xbf16>, vector<16x256xbf16>, vector<64x256xf32> -> vector<64x256xf32>
    %c0_20 = arith.constant 0 : index
    %c0_21 = arith.constant 0 : index
    %43 = vector.load %arg4[%c0_20, %c0_21] : memref<1x256xf32, #tpu.memory_space<vmem>>, vector<1x256xf32>
    %44 = vector.broadcast %43 : vector<1x256xf32> to vector<64x256xf32>
    %45 = arith.addf %42, %44 : vector<64x256xf32>
    %46 = vector.shape_cast %45 : vector<64x256xf32> to vector<8x8x256xf32>
    %c0_22 = arith.constant 0 : index
    %c0_23 = arith.constant 0 : index
    %c0_24 = arith.constant 0 : index
    %47 = vector.load %arg10[%c0_22, %c0_23, %c0_24] : memref<8x8x256xf32, #tpu.memory_space<vmem>>, vector<8x8x256xf32>
    tpu.vector_store %arg10[%c0_22, %c0_23, %c0_24], %46 {strides = array<i32>} : memref<8x8x256xf32, #tpu.memory_space<vmem>>, vector<8x8x256xf32>,
    %c0_25 = arith.constant 0 : index
    %c0_26 = arith.constant 0 : index
    %48 = vector.load %arg5[%c0_25, %c0_26] : memref<64x256xbf16, #tpu.memory_space<vmem>>, vector<64x256xbf16>
    %c0_i32_27 = arith.constant 0 : i32
    %49 = arith.subi %0, %c0_i32_27 : i32
    %50 = arith.addi %c0_i32_27, %49 : i32
    %c1_i32_28 = arith.constant 1 : i32
    %51:2 = scf.for %arg11 = %c0_i32_27 to %50 step %c1_i32_28 iter_args(%arg12 = %36, %arg13 = %37) -> (vector<8x64xf32>, vector<8x64xf32>)  : i32 {
      %c1_i32_44 = arith.constant 1 : i32
      %66 = arith.subi %0, %c1_i32_44 : i32
      %67 = arith.subi %66, %arg11 : i32
      %68 = arith.index_cast %arg11 : i32 to index
      %c0_45 = arith.constant 0 : index
      %c0_46 = arith.constant 0 : index
      %69 = vector.load %arg10[%68, %c0_45, %c0_46] : memref<8x8x256xf32, #tpu.memory_space<vmem>>, vector<1x8x256xf32>
      %70 = vector.shape_cast %69 : vector<1x8x256xf32> to vector<8x256xf32>
      %71 = arith.index_cast %67 : i32 to index
      %c0_47 = arith.constant 0 : index
      %c0_48 = arith.constant 0 : index
      %72 = vector.load %arg10[%71, %c0_47, %c0_48] : memref<8x8x256xf32, #tpu.memory_space<vmem>>, vector<1x8x256xf32>
      %73 = vector.shape_cast %72 : vector<1x8x256xf32> to vector<8x256xf32>
      %74 = arith.select %20, %70, %73 : vector<8x256xi1>, vector<8x256xf32>
      %75 = arith.truncf %arg12 : vector<8x64xf32> to vector<8x64xbf16>
      %cst_49 = arith.constant dense<0.000000e+00> : vector<8x256xf32>
      %76 = tpu.matmul %75, %48, %cst_49 {dimension_numbers = #tpu.dot_dimension_numbers<[1], [0], [0], [1], [0, 0, 1, 1], [], []>} : vector<8x64xbf16>, vector<64x256xbf16>, vector<8x256xf32> -> vector<8x256xf32>
      %77 = arith.addf %74, %76 : vector<8x256xf32>
      %78 = arith.mulf %77, %28 : vector<8x256xf32>
      %79 = math.tanh %78 : vector<8x256xf32>
      %80 = arith.mulf %28, %79 : vector<8x256xf32>
      %81 = arith.addf %80, %30 : vector<8x256xf32>
      %82 = vector.extract_strided_slice %81 {offsets = [0, 0], sizes = [8, 64], strides = [1, 1]} : vector<8x256xf32> to vector<8x64xf32>
      %83 = vector.extract_strided_slice %81 {offsets = [0, 64], sizes = [8, 64], strides = [1, 1]} : vector<8x256xf32> to vector<8x64xf32>
      %84 = vector.extract_strided_slice %81 {offsets = [0, 128], sizes = [8, 64], strides = [1, 1]} : vector<8x256xf32> to vector<8x64xf32>
      %85 = vector.extract_strided_slice %81 {offsets = [0, 192], sizes = [8, 64], strides = [1, 1]} : vector<8x256xf32> to vector<8x64xf32>
      %86 = arith.mulf %83, %arg13 : vector<8x64xf32>
      %87 = arith.mulf %82, %84 : vector<8x64xf32>
      %88 = arith.addf %86, %87 : vector<8x64xf32>
      %89 = math.tanh %88 : vector<8x64xf32>
      %90 = arith.mulf %85, %89 : vector<8x64xf32>
      %91 = vector.broadcast %arg11 : i32 to vector<8x1xi32>
      %92 = arith.cmpi slt, %91, %1 : vector<8x1xi32>
      %93 = vector.broadcast %67 : i32 to vector<8x1xi32>
      %94 = arith.cmpi slt, %93, %1 : vector<8x1xi32>
      %95 = vector.broadcast %arg11 : i32 to vector<8x64xi32>
      %96 = vector.broadcast %67 : i32 to vector<8x64xi32>
      %97 = arith.select %33, %95, %96 : vector<8x64xi1>, vector<8x64xi32>
      %98 = vector.broadcast %1 : vector<8x1xi32> to vector<8x64xi32>
      %99 = arith.cmpi slt, %97, %98 : vector<8x64xi32>
      %100 = arith.select %99, %90, %arg12 : vector<8x64xi1>, vector<8x64xf32>
      %101 = arith.select %99, %88, %arg13 : vector<8x64xi1>, vector<8x64xf32>
      %102 = vector.extract_strided_slice %90 {offsets = [0, 0], sizes = [8, 32], strides = [1, 1]} : vector<8x64xf32> to vector<8x32xf32>
      %cst_50 = arith.constant 0.000000e+00 : f32
      %103 = vector.shape_cast %92 : vector<8x1xi1> to vector<8x1xi1>
      %104 = vector.broadcast %103 : vector<8x1xi1> to vector<8x32xi1>
      %105 = vector.broadcast %cst_50 : f32 to vector<8x32xf32>
      %106 = arith.select %104, %102, %105 : vector<8x32xi1>, vector<8x32xf32>
      %107 = arith.index_cast %arg11 : i32 to index
      %c0_51 = arith.constant 0 : index
      %c0_52 = arith.constant 0 : index
      %108 = vector.load %arg9[%107, %c0_51, %c0_52] : memref<8x8x128xf32, #tpu.memory_space<vmem>>, vector<1x8x32xf32>
      %109 = vector.shape_cast %108 : vector<1x8x32xf32> to vector<8x32xf32>
      %110 = vector.shape_cast %106 : vector<8x32xf32> to vector<1x8x32xf32>
      tpu.vector_store %arg9[%107, %c0_51, %c0_52], %110 {strides = array<i32>} : memref<8x8x128xf32, #tpu.memory_space<vmem>>, vector<1x8x32xf32>,
      %111 = vector.extract_strided_slice %90 {offsets = [0, 32], sizes = [8, 32], strides = [1, 1]} : vector<8x64xf32> to vector<8x32xf32>
      %cst_53 = arith.constant 0.000000e+00 : f32
      %112 = vector.shape_cast %94 : vector<8x1xi1> to vector<8x1xi1>
      %113 = vector.broadcast %112 : vector<8x1xi1> to vector<8x32xi1>
      %114 = vector.broadcast %cst_53 : f32 to vector<8x32xf32>
      %115 = arith.select %113, %111, %114 : vector<8x32xi1>, vector<8x32xf32>
      %116 = arith.index_cast %67 : i32 to index
      %c0_54 = arith.constant 0 : index
      %c32 = arith.constant 32 : index
      %117 = vector.load %arg9[%116, %c0_54, %c32] : memref<8x8x128xf32, #tpu.memory_space<vmem>>, vector<1x8x32xf32>
      %118 = vector.shape_cast %117 : vector<1x8x32xf32> to vector<8x32xf32>
      %119 = vector.shape_cast %115 : vector<8x32xf32> to vector<1x8x32xf32>
      tpu.vector_store %arg9[%116, %c0_54, %c32], %119 {strides = array<i32>} : memref<8x8x128xf32, #tpu.memory_space<vmem>>, vector<1x8x32xf32>,
      scf.yield %100, %101 : vector<8x64xf32>, vector<8x64xf32>
    }
    %c0_29 = arith.constant 0 : index
    %c0_30 = arith.constant 0 : index
    %c0_31 = arith.constant 0 : index
    %52 = vector.load %arg9[%c0_29, %c0_30, %c0_31] : memref<8x8x128xf32, #tpu.memory_space<vmem>>, vector<8x8x64xf32>
    %53 = vector.shape_cast %52 : vector<8x8x64xf32> to vector<64x64xf32>
    %54 = arith.truncf %53 : vector<64x64xf32> to vector<64x64xbf16>
    %c0_32 = arith.constant 0 : index
    %c0_33 = arith.constant 0 : index
    %55 = vector.load %arg6[%c0_32, %c0_33] : memref<64x256xbf16, #tpu.memory_space<vmem>>, vector<64x256xbf16>
    %cst_34 = arith.constant dense<0.000000e+00> : vector<64x256xf32>
    %56 = tpu.matmul %54, %55, %cst_34 {dimension_numbers = #tpu.dot_dimension_numbers<[1], [0], [0], [1], [0, 0, 1, 1], [], []>} : vector<64x64xbf16>, vector<64x256xbf16>, vector<64x256xf32> -> vector<64x256xf32>
    %c0_35 = arith.constant 0 : index
    %c0_36 = arith.constant 0 : index
    %57 = vector.load %arg7[%c0_35, %c0_36] : memref<1x256xf32, #tpu.memory_space<vmem>>, vector<1x256xf32>
    %58 = vector.broadcast %57 : vector<1x256xf32> to vector<64x256xf32>
    %59 = arith.addf %56, %58 : vector<64x256xf32>
    %60 = vector.shape_cast %59 : vector<64x256xf32> to vector<8x8x256xf32>
    %c0_37 = arith.constant 0 : index
    %c0_38 = arith.constant 0 : index
    %c0_39 = arith.constant 0 : index
    %61 = vector.load %arg10[%c0_37, %c0_38, %c0_39] : memref<8x8x256xf32, #tpu.memory_space<vmem>>, vector<8x8x256xf32>
    tpu.vector_store %arg10[%c0_37, %c0_38, %c0_39], %60 {strides = array<i32>} : memref<8x8x256xf32, #tpu.memory_space<vmem>>, vector<8x8x256xf32>,
    %c0_40 = arith.constant 0 : index
    %c0_41 = arith.constant 0 : index
    %62 = vector.load %arg8[%c0_40, %c0_41] : memref<64x256xbf16, #tpu.memory_space<vmem>>, vector<64x256xbf16>
    %c0_i32_42 = arith.constant 0 : i32
    %63 = arith.subi %0, %c0_i32_42 : i32
    %64 = arith.addi %c0_i32_42, %63 : i32
    %c1_i32_43 = arith.constant 1 : i32
    %65:2 = scf.for %arg11 = %c0_i32_42 to %64 step %c1_i32_43 iter_args(%arg12 = %36, %arg13 = %37) -> (vector<8x64xf32>, vector<8x64xf32>)  : i32 {
      %c1_i32_44 = arith.constant 1 : i32
      %66 = arith.subi %0, %c1_i32_44 : i32
      %67 = arith.subi %66, %arg11 : i32
      %68 = arith.index_cast %arg11 : i32 to index
      %c0_45 = arith.constant 0 : index
      %c0_46 = arith.constant 0 : index
      %69 = vector.load %arg10[%68, %c0_45, %c0_46] : memref<8x8x256xf32, #tpu.memory_space<vmem>>, vector<1x8x256xf32>
      %70 = vector.shape_cast %69 : vector<1x8x256xf32> to vector<8x256xf32>
      %71 = arith.index_cast %67 : i32 to index
      %c0_47 = arith.constant 0 : index
      %c0_48 = arith.constant 0 : index
      %72 = vector.load %arg10[%71, %c0_47, %c0_48] : memref<8x8x256xf32, #tpu.memory_space<vmem>>, vector<1x8x256xf32>
      %73 = vector.shape_cast %72 : vector<1x8x256xf32> to vector<8x256xf32>
      %74 = arith.select %20, %70, %73 : vector<8x256xi1>, vector<8x256xf32>
      %75 = arith.truncf %arg12 : vector<8x64xf32> to vector<8x64xbf16>
      %cst_49 = arith.constant dense<0.000000e+00> : vector<8x256xf32>
      %76 = tpu.matmul %75, %62, %cst_49 {dimension_numbers = #tpu.dot_dimension_numbers<[1], [0], [0], [1], [0, 0, 1, 1], [], []>} : vector<8x64xbf16>, vector<64x256xbf16>, vector<8x256xf32> -> vector<8x256xf32>
      %77 = arith.addf %74, %76 : vector<8x256xf32>
      %78 = arith.mulf %77, %28 : vector<8x256xf32>
      %79 = math.tanh %78 : vector<8x256xf32>
      %80 = arith.mulf %28, %79 : vector<8x256xf32>
      %81 = arith.addf %80, %30 : vector<8x256xf32>
      %82 = vector.extract_strided_slice %81 {offsets = [0, 0], sizes = [8, 64], strides = [1, 1]} : vector<8x256xf32> to vector<8x64xf32>
      %83 = vector.extract_strided_slice %81 {offsets = [0, 64], sizes = [8, 64], strides = [1, 1]} : vector<8x256xf32> to vector<8x64xf32>
      %84 = vector.extract_strided_slice %81 {offsets = [0, 128], sizes = [8, 64], strides = [1, 1]} : vector<8x256xf32> to vector<8x64xf32>
      %85 = vector.extract_strided_slice %81 {offsets = [0, 192], sizes = [8, 64], strides = [1, 1]} : vector<8x256xf32> to vector<8x64xf32>
      %86 = arith.mulf %83, %arg13 : vector<8x64xf32>
      %87 = arith.mulf %82, %84 : vector<8x64xf32>
      %88 = arith.addf %86, %87 : vector<8x64xf32>
      %89 = math.tanh %88 : vector<8x64xf32>
      %90 = arith.mulf %85, %89 : vector<8x64xf32>
      %91 = vector.broadcast %arg11 : i32 to vector<8x1xi32>
      %92 = arith.cmpi slt, %91, %1 : vector<8x1xi32>
      %93 = vector.broadcast %67 : i32 to vector<8x1xi32>
      %94 = arith.cmpi slt, %93, %1 : vector<8x1xi32>
      %95 = vector.broadcast %arg11 : i32 to vector<8x64xi32>
      %96 = vector.broadcast %67 : i32 to vector<8x64xi32>
      %97 = arith.select %33, %95, %96 : vector<8x64xi1>, vector<8x64xi32>
      %98 = vector.broadcast %1 : vector<8x1xi32> to vector<8x64xi32>
      %99 = arith.cmpi slt, %97, %98 : vector<8x64xi32>
      %100 = arith.select %99, %90, %arg12 : vector<8x64xi1>, vector<8x64xf32>
      %101 = arith.select %99, %88, %arg13 : vector<8x64xi1>, vector<8x64xf32>
      %102 = vector.extract_strided_slice %90 {offsets = [0, 0], sizes = [8, 32], strides = [1, 1]} : vector<8x64xf32> to vector<8x32xf32>
      %cst_50 = arith.constant 0.000000e+00 : f32
      %103 = vector.shape_cast %92 : vector<8x1xi1> to vector<8x1xi1>
      %104 = vector.broadcast %103 : vector<8x1xi1> to vector<8x32xi1>
      %105 = vector.broadcast %cst_50 : f32 to vector<8x32xf32>
      %106 = arith.select %104, %102, %105 : vector<8x32xi1>, vector<8x32xf32>
      %107 = arith.index_cast %arg11 : i32 to index
      %c0_51 = arith.constant 0 : index
      %c64 = arith.constant 64 : index
      %108 = vector.load %arg9[%107, %c0_51, %c64] : memref<8x8x128xf32, #tpu.memory_space<vmem>>, vector<1x8x32xf32>
      %109 = vector.shape_cast %108 : vector<1x8x32xf32> to vector<8x32xf32>
      %110 = vector.shape_cast %106 : vector<8x32xf32> to vector<1x8x32xf32>
      tpu.vector_store %arg9[%107, %c0_51, %c64], %110 {strides = array<i32>} : memref<8x8x128xf32, #tpu.memory_space<vmem>>, vector<1x8x32xf32>,
      %111 = vector.extract_strided_slice %90 {offsets = [0, 32], sizes = [8, 32], strides = [1, 1]} : vector<8x64xf32> to vector<8x32xf32>
      %cst_52 = arith.constant 0.000000e+00 : f32
      %112 = vector.shape_cast %94 : vector<8x1xi1> to vector<8x1xi1>
      %113 = vector.broadcast %112 : vector<8x1xi1> to vector<8x32xi1>
      %114 = vector.broadcast %cst_52 : f32 to vector<8x32xf32>
      %115 = arith.select %113, %111, %114 : vector<8x32xi1>, vector<8x32xf32>
      %116 = arith.index_cast %67 : i32 to index
      %c0_53 = arith.constant 0 : index
      %c96 = arith.constant 96 : index
      %117 = vector.load %arg9[%116, %c0_53, %c96] : memref<8x8x128xf32, #tpu.memory_space<vmem>>, vector<1x8x32xf32>
      %118 = vector.shape_cast %117 : vector<1x8x32xf32> to vector<8x32xf32>
      %119 = vector.shape_cast %115 : vector<8x32xf32> to vector<1x8x32xf32>
      tpu.vector_store %arg9[%116, %c0_53, %c96], %119 {strides = array<i32>} : memref<8x8x128xf32, #tpu.memory_space<vmem>>, vector<1x8x32xf32>,
      scf.yield %100, %101 : vector<8x64xf32>, vector<8x64xf32>
    }
    return
  }
}

</mosaic_0001>

<bundles_post_ra>
// kernel: tpu_custom_call.1
= control target key start
LH: loop header
LB: loop body
LE: loop exit
PB: predicated region body
PF: predicated region fallthrough
CT: control target
= control target key end

     0   :  { %15 = vsyncpa [#allocation5], 0  ;;  %s1603_s0 = inlined_call_operand.<no memory space> [shape: s32[1], index: 0, kind: input, shape index: {}]   ;;  %s1604_s1 = inlined_call_operand.vmem [shape: s32[8,1], index: 1, kind: input, shape index: {}]   ;;  %s1605_s2 = inlined_call_operand.hbm [shape: f32[8,8,16], index: 2, kind: input, shape index: {}]   ;;  %s1606_s3 = inlined_call_operand.vmem [shape: bf16[16,256], index: 3, kind: input, shape index: {}]   ;;  %s1607_s4 = inlined_call_operand.vmem [shape: f32[1,256], index: 4, kind: input, shape index: {}]   ;;  %s1608_s5 = inlined_call_operand.hbm [shape: bf16[64,256], index: 5, kind: input, shape index: {}]   ;;  %s1609_s6 = inlined_call_operand.hbm [shape: bf16[64,256], index: 6, kind: input, shape index: {}]   ;;  %s1610_s7 = inlined_call_operand.vmem [shape: f32[1,256], index: 7, kind: input, shape index: {}]   ;;  %s1611_s8 = inlined_call_operand.hbm [shape: bf16[64,256], index: 8, kind: input, shape index: {}]   ;;  %s1612_s9 = inlined_call_operand.hbm [shape: f32[8,8,128], index: 9, kind: output, shape index: {}]  }
   0x1   :  { %16 = vsyncpa [#allocation8], 0 }
   0x2   :  { %17 = vsyncpa [#allocation11], 0 }
   0x3   :  { %18 = vsyncpa [#allocation6], 0  ;;  %s1197_s30 = smov [#allocation7]   ;;  %s1198_s11 = smov [#allocation4]  }
   0x4   :  { %s44_s10 = sshll.u32 %s1197_s30, 4  ;;  %s28_s12 = sshll.u32 %s1198_s11, 4  ;;  %s45_s10 = int_to_ptr.vmem [resolvable:$true] %s44_s10  ;;  %s1261_s12 = int_to_ptr.vmem [resolvable:$true] %s28_s12 }
   0x5   :  { %s1031_s15 = scalar_lea.hbm %s1608_s5, 1024 }
   0x6   :  { %p1032_p0 = scmp.ne.s32.totalorder %s1608_s5, %s1031_s15  ;;  %p1035_p1 = scmp.lt.u32.totalorder %s1031_s15, %s1608_s5 }
   0x8   :  { %p1037_p2 = pnand %p1035_p1, %p1032_p0 }
   0xa   :  { %1040 = shalt.err (!%p1037_p2)
}
   0xb   :  { %s1041_s20 = scalar_lea.vmem %s45_s10, 1024  ;;  %p1046_p4 = scmp.lt.s32.totalorder %s45_s10, %s45_s10 }
   0xc   :  { %p1042_p3 = scmp.ne.s32.totalorder %s45_s10, %s1041_s20  ;;  %p1047_p5 = scmp.lt.s32.totalorder %s1041_s20, %s1041_s20 }
   0xe   :  { %p1048_p6 = por %p1047_p5, %p1046_p4 }
  0x10   :  { %p1049_p7 = pnand %p1048_p6, %p1042_p3 }
  0x12   :  { %1052 = shalt.err (!%p1049_p7)
}
  0x13   :  { %s1199_s21 = smov 128   ;;  %s1200_s22 = smov 8  }
  0x14   :  { %50 = dma.hbm_to_vmem [thread:$0]  %s1608_s5, 1024, %s45_s10, [#allocation8], %s1199_s21, %s1199_s21, %s1200_s22  }
  0x15   :  { %s1053_s27 = scalar_lea.hbm %s1605_s2, 1024 }
  0x16   :  { %p1054_p8 = scmp.ne.s32.totalorder %s1605_s2, %s1053_s27  ;;  %p1057_p9 = scmp.lt.u32.totalorder %s1053_s27, %s1605_s2 }
  0x18   :  { %p1059_p10 = pnand %p1057_p9, %p1054_p8 }
  0x1a   :  { %1062 = shalt.err (!%p1059_p10)
}
  0x1b   :  { %s1063_s13 = scalar_lea.vmem %s1261_s12, 1024  ;;  %p1068_p12 = scmp.lt.s32.totalorder %s1261_s12, %s1261_s12 }
  0x1c   :  { %p1064_p11 = scmp.ne.s32.totalorder %s1261_s12, %s1063_s13  ;;  %p1069_p13 = scmp.lt.s32.totalorder %s1063_s13, %s1063_s13 }
  0x1e   :  { %p1070_p0 = por %p1069_p13, %p1068_p12 }
  0x20   :  { %p1071_p1 = pnand %p1070_p0, %p1064_p11 }
  0x22   :  { %1074 = shalt.err (!%p1071_p1)
}
  0x23   :  { %34 = dma.hbm_to_vmem [thread:$0]  %s1605_s2, 1024, %s1261_s12, [#allocation5], %s1199_s21, %s1199_s21, %s1200_s22  }
  0x24   :  { %s1201_s14 = smov [#allocation9]   ;;  %s1202_s16 = smov [#allocation10]  }
  0x25   :  { %s56_s15 = sshll.u32 %s1201_s14, 4  ;;  %s70_s17 = sshll.u32 %s1202_s16, 4  ;;  %s57_s15 = int_to_ptr.vmem [resolvable:$true] %s56_s15  ;;  %s1298_s17 = int_to_ptr.vmem [resolvable:$true] %s70_s17 }
  0x26   :  { %s1075_s20 = scalar_lea.hbm %s1609_s6, 1024 }
  0x27   :  { %p1076_p2 = scmp.ne.s32.totalorder %s1609_s6, %s1075_s20  ;;  %p1079_p3 = scmp.lt.u32.totalorder %s1075_s20, %s1609_s6 }
  0x29   :  { %p1081_p4 = pnand %p1079_p3, %p1076_p2 }
  0x2b   :  { %1084 = shalt.err (!%p1081_p4)
}
  0x2c   :  { %s1085_s2 = scalar_lea.vmem %s57_s15, 1024  ;;  %p1090_p6 = scmp.lt.s32.totalorder %s57_s15, %s57_s15 }
  0x2d   :  { %p1086_p5 = scmp.ne.s32.totalorder %s57_s15, %s1085_s2  ;;  %p1091_p7 = scmp.lt.s32.totalorder %s1085_s2, %s1085_s2 }
  0x2f   :  { %p1092_p8 = por %p1091_p7, %p1090_p6 }
  0x31   :  { %p1093_p9 = pnand %p1092_p8, %p1086_p5 }
  0x33   :  { %1096 = shalt.err (!%p1093_p9)
}
  0x34   :  { %62 = dma.hbm_to_vmem [thread:$0]  %s1609_s6, 1024, %s57_s15, [#allocation8], %s1199_s21, %s1199_s21, %s1200_s22  }
  0x35   :  { %s1097_s30 = scalar_lea.hbm %s1611_s8, 1024 }
  0x36   :  { %p1098_p10 = scmp.ne.s32.totalorder %s1611_s8, %s1097_s30  ;;  %p1101_p11 = scmp.lt.u32.totalorder %s1097_s30, %s1611_s8 }
  0x38   :  { %p1103_p12 = pnand %p1101_p11, %p1098_p10 }
  0x3a   :  { %1106 = shalt.err (!%p1103_p12)
}
  0x3b   :  { %s1107_s14 = scalar_lea.vmem %s1298_s17, 1024  ;;  %p1112_p0 = scmp.lt.s32.totalorder %s1298_s17, %s1298_s17 }
  0x3c   :  { %p1108_p13 = scmp.ne.s32.totalorder %s1298_s17, %s1107_s14  ;;  %p1113_p1 = scmp.lt.s32.totalorder %s1107_s14, %s1107_s14 }
  0x3e   :  { %p1114_p2 = por %p1113_p1, %p1112_p0 }
  0x40   :  { %p1115_p3 = pnand %p1114_p2, %p1108_p13 }
  0x42   :  { %1118 = shalt.err (!%p1115_p3)
}
  0x43   :  { %76 = dma.hbm_to_vmem [thread:$0]  %s1611_s8, 1024, %s1298_s17, [#allocation11], %s1199_s21, %s1199_s21, %s1200_s22  }
  0x44   :  { %1165 = dma.done.wait [#allocation5], 1024  }
  0x45   :  { %1166 = vsyncadd [#allocation5], 4294966272 }
  0x46   :  { %1167 = dma.done.wait [#allocation8], 2048  }
  0x47   :  { %1168 = vsyncadd [#allocation8], 4294965248 }
  0x48   :  { %1169 = dma.done.wait [#allocation11], 1024  }
  0x49   :  { %1170 = vsyncadd [#allocation11], 4294966272  ;;  %v92_v0 = vlaneseq  ;;  %v1203_v1 = vmov 0.0   ;;  %v1204_v2 = vmov 0   ;;  %v1349_v8 = vld [vmem:[%s1604_s1] sm:$0xff]  ;;  %v1353_v10 = vld [vmem:[#allocation7 + $0x8] sm:$0xff] }
  0x4a   :  { %132 = vst [vmem:[#allocation12] sm:$0xff] %v1203_v1  ;;  %133 = vst [vmem:[#allocation12 + $0x8] sm:$0xff] %v1203_v1  ;;  %221 = vmatprep.mubr.bf16.mxu0 %v1204_v2  ;;  %241 = vmatprep.mubr.bf16.mxu1 %v1204_v2  ;;  %v1351_v9 = vld [vmem:[#allocation7] sm:$0xff]  ;;  %v1205_v11 = vmov 0.5   ;;  %v1357_v13 = vld [vmem:[#allocation7 + $0x10] sm:$0xff]  ;;  %vm176_vm4 = vcmask 130048  }
  0x4b   :  { %134 = vst [vmem:[#allocation12 + $0x10] sm:$0xff] %v1203_v1  ;;  %135 = vst [vmem:[#allocation12 + $0x18] sm:$0xff] %v1203_v1  ;;  %v1337_v3 = vand.u32 127, %v92_v0  ;;  %v1359_v14 = vld [vmem:[#allocation7 + $0x18] sm:$0xff]  ;;  %v1361_v15 = vld [vmem:[#allocation7 + $0x20] sm:$0xff]  ;;  %v1382_v35 = vshrl.u32 %v92_v0, 7 }
  0x4c   :  { %136 = vst [vmem:[#allocation12 + $0x20] sm:$0xff] %v1203_v1  ;;  %137 = vst [vmem:[#allocation12 + $0x28] sm:$0xff] %v1203_v1  ;;  %v1368_v18 = vld [vmem:[#allocation7 + $0x28] sm:$0xff]  ;;  %v1370_v19 = vld [vmem:[#allocation7 + $0x30] sm:$0xff]  ;;  %p878_p4 = scmp.le.s32.totalorder %s1603_s0, 0 }
  0x4d   :  { %138 = vst [vmem:[#allocation12 + $0x30] sm:$0xff] %v1203_v1  ;;  %139 = vst [vmem:[#allocation12 + $0x38] sm:$0xff] %v1203_v1  ;;  %v94_v4 = vadd.s32 128, %v1337_v3  ;;  %v99_v5 = vand.u32 63, %v1337_v3  ;;  %vm131_vm0 = vcmp.lt.s32.totalorder %v1337_v3, 32  ;;  %v1372_v20 = vld [vmem:[#allocation7 + $0x38] sm:$0xff] }
  0x4e   :  { %v1000_v21 = vld [vmem:[%s1606_s3 + $0x4] ss:$8 sps:$4 sm:$0xff]   ;;  %v1002_v22 = vld [vmem:[%s1606_s3] ss:$8 sps:$4 sm:$0xff]   ;;  %v142_v29 = vld [vmem:[#allocation4 + $0x10] sm:$0xff]  ;;  %v158_v36 = vsub.s32 0, %v1382_v35 }
  0x4f   :  { %v106_v6 = vand.u32 63, %v94_v4  ;;  %vm1342_vm1 = vcmp.lt.s32.totalorder %v99_v5, 32  ;;  %vm124_vm2 = vcmp.lt.s32.totalorder %v94_v4, 192  ;;  %v140_v23 = vld [vmem:[#allocation4] sm:$0xff]  ;;  %v141_v24 = vld [vmem:[#allocation4 + $0x8] sm:$0xff]  ;;  %189 = vmatprep.subr.bf16.mxu0 %v1000_v21  ;;  %928 = vmatprep.subr.bf16.mxu1 %v1000_v21  ;;  %v143_v30 = vld [vmem:[#allocation4 + $0x18] sm:$0xff] }
  0x50   :  { %v1355_v12 = vsel %vm124_vm2, 1.0, %v1205_v11  ;;  %v148_v25 = vpack.c.bf16 %v141_v24, %v140_v23  ;;  %v144_v26 = vld [vmem:[#allocation4 + $0x20] sm:$0xff]  ;;  %v145_v27 = vld [vmem:[#allocation4 + $0x28] sm:$0xff]  ;;  %190 = vmatpush1.bf16.msra.mxu0 %v1002_v22  ;;  %929 = vmatpush1.bf16.msra.mxu1 %v1002_v22  ;;  %v146_v31 = vld [vmem:[#allocation4 + $0x30] sm:$0xff]  ;;  %v149_v33 = vpack.c.bf16 %v143_v30, %v142_v29  ;;  %v162_v38 = vsub.s32 1, %v1382_v35  ;;  %s1404_s26 = smov (!%p878_p4), 0  }
  0x51   :  { %vm1363_vm3 = vcmp.lt.s32.totalorder %v106_v6, 32  ;;  %v130_v17 = vsub.f32 1.0, %v1355_v12  ;;  %v150_v28 = vpack.c.bf16 %v145_v27, %v144_v26  ;;  %v147_v32 = vld [vmem:[#allocation4 + $0x38] sm:$0xff]  ;;  %v154_v37 = vld [vmem:[%s1607_s4] sm:$0x3]  ;;  %v1400_v24 = vmov (!%p878_p4), 0.0  }
  0x52   :  { %v151_v34 = vpack.c.bf16 %v147_v32, %v146_v31  ;;  %v159_v39 = vrot.slane %v154_v37, %v158_v36  ;;  %v163_v40 = vrot.slane %v154_v37, %v162_v38 }
  0x53   :  { %874 = vmatmul.mubr.msk.bf16.vlgmr.msra.gmra.mrb[0].mxu0 %vm176_vm4, %v148_v25  ;;  %876 = vmatmul.mubr.msk.bf16.vlgmr.msra.gmra.mrb[0].mxu1 %vm176_vm4, %v150_v28  ;;  %v1402_v25 = vmov (!%p878_p4), 0.0  }
  0x54   :  { %231 = vmatprep.mubr.bf16.mxu0 %v1204_v2  ;;  %251 = vmatprep.mubr.bf16.mxu1 %v1204_v2 }
  0x5b   :  { %875 = vmatmul.mubr.msk.bf16.gmra.mrb[4].mxu0 %vm176_vm4, %v149_v33  ;;  %877 = vmatmul.mubr.msk.bf16.gmra.mrb[4].mxu1 %vm176_vm4, %v151_v34 }
 0x126   :  { %v223_v41 = vpop.f32.mrb[0].mxu0  ;;  %v243_v42 = vpop.f32.mrb[0].mxu1 }
 0x127   :  { %v224_v43 = vadd.f32 %v223_v41, %v159_v39  ;;  %v244_v44 = vadd.f32 %v243_v42, %v159_v39  ;;  %v225_v45 = vpop.f32.mrb[1].mxu0  ;;  %v245_v46 = vpop.f32.mrb[1].mxu1 }
 0x128   :  { %v226_v47 = vadd.f32 %v225_v45, %v163_v40  ;;  %v246_v48 = vadd.f32 %v245_v46, %v163_v40  ;;  %v227_v49 = vpop.f32.mrb[2].mxu0  ;;  %v247_v50 = vpop.f32.mrb[2].mxu1 }
 0x129   :  { %262 = vst [vmem:[#allocation2] sm:$0xff] %v224_v43  ;;  %270 = vst [vmem:[#allocation2 + $0x40] sm:$0xff] %v244_v44  ;;  %v228_v51 = vadd.f32 %v227_v49, %v159_v39  ;;  %v248_v52 = vadd.f32 %v247_v50, %v159_v39  ;;  %v229_v53 = vpop.f32.mrb[3].mxu0  ;;  %v249_v54 = vpop.f32.mrb[3].mxu1 }
 0x12a   :  { %263 = vst [vmem:[#allocation2 + $0x8] sm:$0xff] %v226_v47  ;;  %271 = vst [vmem:[#allocation2 + $0x48] sm:$0xff] %v246_v48  ;;  %v230_v55 = vadd.f32 %v229_v53, %v163_v40  ;;  %v250_v56 = vadd.f32 %v249_v54, %v163_v40 }
 0x12b   :  { %264 = vst [vmem:[#allocation2 + $0x10] sm:$0xff] %v228_v51  ;;  %272 = vst [vmem:[#allocation2 + $0x50] sm:$0xff] %v248_v52 }
 0x12c   :  { %265 = vst [vmem:[#allocation2 + $0x18] sm:$0xff] %v230_v55  ;;  %273 = vst [vmem:[#allocation2 + $0x58] sm:$0xff] %v250_v56 }
 0x12e   :  { %v233_v57 = vpop.f32.mrb[4].mxu0  ;;  %v253_v58 = vpop.f32.mrb[4].mxu1  ;;  %854 = sbr.rel (%p878_p4) target bundleno = 815 (0x32f), region = 88 }
 0x12f   :  { %v234_v59 = vadd.f32 %v233_v57, %v159_v39  ;;  %v254_v60 = vadd.f32 %v253_v58, %v159_v39  ;;  %v235_v61 = vpop.f32.mrb[5].mxu0  ;;  %v255_v62 = vpop.f32.mrb[5].mxu1 }
 0x130   :  { %v236_v63 = vadd.f32 %v235_v61, %v163_v40  ;;  %v256_v0 = vadd.f32 %v255_v62, %v163_v40  ;;  %v237_v1 = vpop.f32.mrb[6].mxu0  ;;  %v257_v4 = vpop.f32.mrb[6].mxu1 }
 0x131   :  { %266 = vst [vmem:[#allocation2 + $0x20] sm:$0xff] %v234_v59  ;;  %274 = vst [vmem:[#allocation2 + $0x60] sm:$0xff] %v254_v60  ;;  %v238_v5 = vadd.f32 %v237_v1, %v159_v39  ;;  %v258_v6 = vadd.f32 %v257_v4, %v159_v39  ;;  %v239_v11 = vpop.f32.mrb[7].mxu0  ;;  %v259_v21 = vpop.f32.mrb[7].mxu1 }
 0x132   :  { %267 = vst [vmem:[#allocation2 + $0x28] sm:$0xff] %v236_v63  ;;  %275 = vst [vmem:[#allocation2 + $0x68] sm:$0xff] %v256_v0  ;;  %v240_v22 = vadd.f32 %v239_v11, %v163_v40  ;;  %v260_v23 = vadd.f32 %v259_v21, %v163_v40 }
 0x133   :  { %268 = vst [vmem:[#allocation2 + $0x30] sm:$0xff] %v238_v5  ;;  %276 = vst [vmem:[#allocation2 + $0x70] sm:$0xff] %v258_v6 }
 0x134   :  { %269 = vst [vmem:[#allocation2 + $0x38] sm:$0xff] %v240_v22  ;;  %277 = vst [vmem:[#allocation2 + $0x78] sm:$0xff] %v260_v23 }
 0x135 LB: > { %v885_v26 = vcombine.high %v1351_v9, %v1353_v10  ;;  %v884_v27 = vcombine.low %v1351_v9, %v1353_v10  ;;  %v887_v28 = vcombine.high %v1357_v13, %v1359_v14  ;;  %v886_v29 = vcombine.low %v1357_v13, %v1359_v14  ;;  %s1207_s2 = smov 64   ;;  %s879_s28 = sadd.s32 4294967295, %s1603_s0  ;;  %s1183_s26 = sphi %s1404_s26, %s289_s26   ;;  %v1179_v25 = vphi %v1402_v25, %v430_v25   ;;  %v1175_v24 = vphi %v1400_v24, %v435_v24  }
 0x136   : > { %v1206_v30 = vmov 0   ;;  %v889_v31 = vcombine.high %v1361_v15, %v1368_v18  ;;  %405 = vrot.lane.b32.xlu0 %v1175_v24, %s1207_s2  ;;  %v888_v32 = vcombine.low %v1361_v15, %v1368_v18  ;;  %v891_v33 = vcombine.high %v1370_v19, %v1372_v20  ;;  %s1441_s29 = ssub.s32 %s879_s28, %s1183_s26  ;;  %s924_s30 = sshll.u32 %s1183_s26, 4 }
 0x137   : > { %353 = vmatprep.subr.bf16.mxu0 %v885_v26  ;;  %385 = vmatprep.mubr.bf16.mxu0 %v1206_v30  ;;  %v890_v34 = vcombine.low %v1370_v19, %v1372_v20  ;;  %v308_v37 = vpack.c.bf16 %v1179_v25, %v1179_v25  ;;  %vm349_vm5 = vcmask 523264   ;;  %v417_v39 = vstv %s1183_s26  ;;  %s925_s11 = sshll.u32 %s1441_s29, 4  ;;  %s298_s13 = scalar_lea.vmem [#allocation2], %s924_s30 }
 0x138   : > { %354 = vmatpush1.bf16.msra.mxu0 %v884_v27  ;;  %1003 = vset.pattern.permute.xlu1 %v1206_v30  ;;  %vm418_vm6 = vcmp.lt.s32.totalorder %v417_v39, %v1349_v8  ;;  %v419_v41 = vstv %s1441_s29  ;;  %s303_s5 = scalar_lea.vmem [#allocation2], %s925_s11  ;;  %s893_s10 = sshll.u32 %s1183_s26, 3  ;;  %vm448_vm11 = vcmask 261120   ;;  %vm462_vm12 = vcmask 523520  }
 0x139   : > { %355 = vmatprep.subr.bf16.mxu0 %v887_v28  ;;  %1004 = vset.pattern.permute.xlu0 %v1206_v30  ;;  %v436_v40 = vsel %vm418_vm6, 1, %v1206_v30  ;;  %vm420_vm7 = vcmp.lt.s32.totalorder %v419_v41, %v1349_v8  ;;  %v421_v28 = vsel %vm131_vm0, %v417_v39, %v419_v41  ;;  %s894_s14 = sshll.u32 %s1441_s29, 3  ;;  %s447_s6 = scalar_lea.vmem [#allocation12], %s893_s10 }
 0x13a   : > { %438 = vperm.xlu1 %1003, %v436_v40   ;;  %v450_v42 = vsel %vm420_vm7, 1, %v1206_v30  ;;  %s461_s15 = scalar_lea.vmem [#allocation12], %s894_s14  ;;  %s289_s26 = sadd.s32 1, %s1183_s26  }
 0x13b   : > { %v299_v43 = vld [vmem:[%s298_s13] sm:$0xff]  ;;  %v300_v45 = vld [vmem:[%s298_s13 + $0x8] sm:$0xff]  ;;  %p288_p5 = scmp.ge.s32.totalorder %s289_s26, %s1603_s0 }
 0x13c   : > { %356 = vmatpush1.bf16.msra.mxu0 %v886_v29  ;;  %v304_v44 = vld [vmem:[%s303_s5] sm:$0xff]  ;;  %v305_v46 = vld [vmem:[%s303_s5 + $0x8] sm:$0xff] }
 0x13d   : > { %357 = vmatprep.subr.bf16.mxu0 %v889_v31  ;;  %v306_v47 = vsel %vm1342_vm1, %v299_v43, %v304_v44  ;;  %v307_v48 = vsel %vm1363_vm3, %v300_v45, %v305_v46 }
 0x13e   : > { %452 = vperm.xlu1 %1003, %v450_v42  }
 0x140   : > { %358 = vmatpush1.bf16.msra.mxu0 %v888_v32 }
 0x141   : > { %359 = vmatprep.subr.bf16.mxu0 %v891_v33 }
 0x144   : > { %360 = vmatpush1.bf16.msra.mxu0 %v890_v34 }
 0x147   : > { %892 = vmatmul.mubr.msk.bf16.vlgmr.msra.gmra.mrb[0].mxu0 %vm349_vm5, %v308_v37 }
 0x1a8   : > { %v406_v0 = vpop.permute.xlu0 %405 }
 0x1b9   : > { %v439_v6 = vpop.permute.xlu1 %438 }
 0x1ba   : > { %vm440_vm8 = vcmp.eq.s32.totalorder %v439_v6, 1 }
 0x1bd   : > { %v453_v22 = vpop.permute.xlu1 %452 }
 0x1be   : > { %vm454_vm9 = vcmp.eq.s32.totalorder %v453_v22, 1 }
 0x21a   : > { %v387_v49 = vpop.f32.mrb[0].mxu0 }
 0x21b   : > { %v394_v50 = vadd.f32 %v387_v49, %v306_v47  ;;  %v389_v51 = vpop.f32.mrb[1].mxu0 }
 0x21c   : > { %v395_v52 = vadd.f32 %v389_v51, %v307_v48  ;;  %v391_v53 = vpop.f32.mrb[2].mxu0 }
 0x21d   : > { %v396_v54 = vmul.f32 0.5, %v394_v50  ;;  %v392_v55 = vpop.f32.mrb[3].mxu0 }
 0x21e   : > { %v397_v56 = vmul.f32 %v395_v52, %v1355_v12 }
 0x21f   : > { %1005 = vtanh.f32 %v396_v54 }
 0x220   : > { %1007 = vtanh.f32 %v397_v56 }
 0x229   : > { %v1006_v57 = vpop.eup %1005 }
 0x22a   : > { %v1008_v58 = vpop.eup %1007  ;;  %v400_v59 = vmul.f32 0.5, %v1006_v57 }
 0x22b   : > { %v401_v60 = vmul.f32 %v1008_v58, %v1355_v12 }
 0x22c   : > { %v402_v61 = vadd.f32 0.5, %v400_v59 }
 0x22d   : > { %v403_v62 = vadd.f32 %v401_v60, %v130_v17 }
 0x22e   : > { %v408_v1 = vmul.f32 %v406_v0, %v402_v61 }
 0x22f   : > { %v409_v63 = vmul.f32 %v403_v62, %v402_v61 }
 0x231   : > { %411 = vrot.lane.b32.xlu0 %v409_v63, %s1207_s2 }
 0x235   : > { %423 = vperm.xlu0 %1004, %v1349_v8  }
 0x2a3   : > { %v412_v4 = vpop.permute.xlu0 %411 }
 0x2a4   : > { %v414_v5 = vadd.f32 %v412_v4, %v408_v1 }
 0x2a6   : > { %1009 = vtanh.f32 %v414_v5  ;;  %432 = vrot.lane.b32.xlu0 %v414_v5, %s1207_s2 }
 0x2b0   : > { %v1010_v11 = vpop.eup %1009 }
 0x2b1   : > { %v416_v21 = vmul.f32 %v1010_v11, %v403_v62 }
 0x2b3   : > { %427 = vrot.lane.b32.xlu1 %v416_v21, %s1207_s2  ;;  %v441_v23 = vsel %vm440_vm8, %v416_v21, 0.0  ;;  %v455_v26 = vsel %vm454_vm9, %v416_v21, 0.0 }
 0x2b4   : > { %v424_v27 = vpop.permute.xlu0 %423 }
 0x2b5   : > { %vm425_vm10 = vcmp.lt.s32.totalorder %v421_v28, %v424_v27 }
 0x2b7   : > { %443 = vrot.lane.b32.xlu1 %v441_v23, %s1207_s2 }
 0x2bb   : > { %457 = vrot.lane.b32.xlu1 %v455_v26, %s1207_s2 }
 0x318   : > { %v433_v29 = vpop.permute.xlu0 %432 }
 0x319   : > { %v435_v24 = vsel %vm425_vm10, %v433_v29, %v1175_v24  }
 0x325   : > { %v428_v30 = vpop.permute.xlu1 %427 }
 0x326   : > { %v430_v25 = vsel %vm425_vm10, %v428_v30, %v1179_v25  }
 0x328   :  { %291 = sbr.rel (!%p288_p5) target bundleno = 309 (0x135), region = 94 }
 0x329   : > { %v444_v31 = vpop.permute.xlu1 %443 }
 0x32a   : > { %449 = vst.msk [vmem:[%s447_s6] sm:$0xff] %vm448_vm11, %v444_v31 }
 0x32d   : > { %v458_v32 = vpop.permute.xlu1 %457 }
 0x32e   : > { %463 = vst.msk [vmem:[%s461_s15] sm:$0xff] %vm462_vm12, %v458_v32 }
 0x32f PF:  { %v1011_v33 = vld [vmem:[#allocation9 + $0x4] ss:$8 sps:$4 sm:$0xff]   ;;  %581 = vmatprep.mubr.bf16.mxu0 %v1204_v2  ;;  %601 = vmatprep.mubr.bf16.mxu1 %v1204_v2  ;;  %v1013_v34 = vld [vmem:[#allocation9] ss:$8 sps:$4 sm:$0xff]   ;;  %v1014_v37 = vld [vmem:[#allocation9 + $0x14] ss:$8 sps:$4 sm:$0xff]  }
 0x330   :  { %549 = vmatprep.subr.bf16.mxu0 %v1011_v33  ;;  %930 = vmatprep.subr.bf16.mxu1 %v1011_v33  ;;  %v1016_v39 = vld [vmem:[#allocation9 + $0x10] ss:$8 sps:$4 sm:$0xff]   ;;  %v1017_v40 = vld [vmem:[#allocation9 + $0x24] ss:$8 sps:$4 sm:$0xff]   ;;  %v1019_v25 = vld [vmem:[#allocation9 + $0x20] ss:$8 sps:$4 sm:$0xff]  }
 0x331   :  { %550 = vmatpush1.bf16.msra.mxu0 %v1013_v34  ;;  %934 = vmatpush1.bf16.msra.mxu1 %v1013_v34  ;;  %v1020_v9 = vld [vmem:[#allocation9 + $0x34] ss:$8 sps:$4 sm:$0xff]   ;;  %v1022_v10 = vld [vmem:[#allocation9 + $0x30] ss:$8 sps:$4 sm:$0xff]   ;;  %vm536_vm13 = vcmask 523264   ;;  %v1485_v46 = vld [vmem:[#allocation10] sm:$0xff] }
 0x332   :  { %551 = vmatprep.subr.bf16.mxu0 %v1014_v37  ;;  %931 = vmatprep.subr.bf16.mxu1 %v1014_v37  ;;  %v1487_v47 = vld [vmem:[#allocation10 + $0x8] sm:$0xff]  ;;  %v1489_v48 = vld [vmem:[#allocation10 + $0x10] sm:$0xff]  ;;  %v1491_v49 = vld [vmem:[#allocation10 + $0x18] sm:$0xff]  ;;  %s1516_s19 = smov (!%p878_p4), 0  }
 0x333   :  { %v1493_v50 = vld [vmem:[#allocation10 + $0x20] sm:$0xff]  ;;  %v1497_v51 = vld [vmem:[#allocation10 + $0x30] sm:$0xff]  ;;  %v1499_v52 = vld [vmem:[#allocation10 + $0x38] sm:$0xff] }
 0x334   :  { %v484_v53 = vld [vmem:[%s1610_s7] sm:$0x3] }
 0x335   :  { %552 = vmatpush1.bf16.msra.mxu0 %v1016_v39  ;;  %935 = vmatpush1.bf16.msra.mxu1 %v1016_v39  ;;  %v464_v13 = vld [vmem:[#allocation12] sm:$0xff]  ;;  %v465_v14 = vld [vmem:[#allocation12 + $0x8] sm:$0xff]  ;;  %v466_v24 = vld [vmem:[#allocation12 + $0x10] sm:$0xff]  ;;  %v489_v54 = vrot.slane %v484_v53, %v158_v36  ;;  %v493_v55 = vrot.slane %v484_v53, %v162_v38 }
 0x336   :  { %553 = vmatprep.subr.bf16.mxu0 %v1017_v40  ;;  %932 = vmatprep.subr.bf16.mxu1 %v1017_v40  ;;  %v468_v15 = vld [vmem:[#allocation12 + $0x20] sm:$0xff]  ;;  %v469_v18 = vld [vmem:[#allocation12 + $0x28] sm:$0xff]  ;;  %v472_v19 = vpack.c.bf16 %v465_v14, %v464_v13  ;;  %v467_v41 = vld [vmem:[#allocation12 + $0x18] sm:$0xff] }
 0x337   :  { %v474_v20 = vpack.c.bf16 %v469_v18, %v468_v15  ;;  %v470_v42 = vld [vmem:[#allocation12 + $0x30] sm:$0xff]  ;;  %v471_v43 = vld [vmem:[#allocation12 + $0x38] sm:$0xff]  ;;  %v473_v44 = vpack.c.bf16 %v467_v41, %v466_v24 }
 0x338   :  { %v475_v45 = vpack.c.bf16 %v471_v43, %v470_v42 }
 0x339   :  { %554 = vmatpush1.bf16.msra.mxu0 %v1019_v25  ;;  %936 = vmatpush1.bf16.msra.mxu1 %v1019_v25  ;;  %v1512_v25 = vmov (!%p878_p4), 0.0  }
 0x33a   :  { %555 = vmatprep.subr.bf16.mxu0 %v1020_v9  ;;  %933 = vmatprep.subr.bf16.mxu1 %v1020_v9  ;;  %v1514_v9 = vmov (!%p878_p4), 0.0  }
 0x33d   :  { %556 = vmatpush1.bf16.msra.mxu0 %v1022_v10  ;;  %937 = vmatpush1.bf16.msra.mxu1 %v1022_v10 }
 0x340   :  { %903 = vmatmul.mubr.msk.bf16.vlgmr.msra.gmra.mrb[0].mxu0 %vm536_vm13, %v472_v19  ;;  %905 = vmatmul.mubr.msk.bf16.vlgmr.msra.gmra.mrb[0].mxu1 %vm536_vm13, %v474_v20 }
 0x341   :  { %591 = vmatprep.mubr.bf16.mxu0 %v1204_v2  ;;  %611 = vmatprep.mubr.bf16.mxu1 %v1204_v2  ;;  %v1495_v2 = vld [vmem:[#allocation10 + $0x28] sm:$0xff] }
 0x348   :  { %904 = vmatmul.mubr.msk.bf16.gmra.mrb[4].mxu0 %vm536_vm13, %v473_v44  ;;  %906 = vmatmul.mubr.msk.bf16.gmra.mrb[4].mxu1 %vm536_vm13, %v475_v45 }
 0x413   :  { %v583_v56 = vpop.f32.mrb[0].mxu0  ;;  %v603_v57 = vpop.f32.mrb[0].mxu1 }
 0x414   :  { %v584_v58 = vadd.f32 %v583_v56, %v489_v54  ;;  %v604_v59 = vadd.f32 %v603_v57, %v489_v54  ;;  %v585_v60 = vpop.f32.mrb[1].mxu0  ;;  %v605_v61 = vpop.f32.mrb[1].mxu1 }
 0x415   :  { %v586_v62 = vadd.f32 %v585_v60, %v493_v55  ;;  %v606_v63 = vadd.f32 %v605_v61, %v493_v55  ;;  %v587_v0 = vpop.f32.mrb[2].mxu0  ;;  %v607_v1 = vpop.f32.mrb[2].mxu1 }
 0x416   :  { %622 = vst [vmem:[#allocation2] sm:$0xff] %v584_v58  ;;  %630 = vst [vmem:[#allocation2 + $0x40] sm:$0xff] %v604_v59  ;;  %v588_v4 = vadd.f32 %v587_v0, %v489_v54  ;;  %v608_v5 = vadd.f32 %v607_v1, %v489_v54  ;;  %v589_v6 = vpop.f32.mrb[3].mxu0  ;;  %v609_v11 = vpop.f32.mrb[3].mxu1 }
 0x417   :  { %623 = vst [vmem:[#allocation2 + $0x8] sm:$0xff] %v586_v62  ;;  %631 = vst [vmem:[#allocation2 + $0x48] sm:$0xff] %v606_v63  ;;  %v590_v35 = vadd.f32 %v589_v6, %v493_v55  ;;  %v610_v36 = vadd.f32 %v609_v11, %v493_v55 }
 0x418   :  { %624 = vst [vmem:[#allocation2 + $0x10] sm:$0xff] %v588_v4  ;;  %632 = vst [vmem:[#allocation2 + $0x50] sm:$0xff] %v608_v5 }
 0x419   :  { %625 = vst [vmem:[#allocation2 + $0x18] sm:$0xff] %v590_v35  ;;  %633 = vst [vmem:[#allocation2 + $0x58] sm:$0xff] %v610_v36 }
 0x41b   :  { %v593_v38 = vpop.f32.mrb[4].mxu0  ;;  %v613_v21 = vpop.f32.mrb[4].mxu1  ;;  %865 = sbr.rel (%p878_p4) target bundleno = 1560 (0x618), region = 99 }
 0x41c   :  { %v594_v22 = vadd.f32 %v593_v38, %v489_v54  ;;  %v614_v23 = vadd.f32 %v613_v21, %v489_v54  ;;  %v595_v26 = vpop.f32.mrb[5].mxu0  ;;  %v615_v27 = vpop.f32.mrb[5].mxu1 }
 0x41d   :  { %v596_v28 = vadd.f32 %v595_v26, %v493_v55  ;;  %v616_v29 = vadd.f32 %v615_v27, %v493_v55  ;;  %v597_v30 = vpop.f32.mrb[6].mxu0  ;;  %v617_v31 = vpop.f32.mrb[6].mxu1 }
 0x41e   :  { %626 = vst [vmem:[#allocation2 + $0x20] sm:$0xff] %v594_v22  ;;  %634 = vst [vmem:[#allocation2 + $0x60] sm:$0xff] %v614_v23  ;;  %v598_v32 = vadd.f32 %v597_v30, %v489_v54  ;;  %v618_v33 = vadd.f32 %v617_v31, %v489_v54  ;;  %v599_v34 = vpop.f32.mrb[7].mxu0  ;;  %v619_v37 = vpop.f32.mrb[7].mxu1 }
 0x41f   :  { %627 = vst [vmem:[#allocation2 + $0x28] sm:$0xff] %v596_v28  ;;  %635 = vst [vmem:[#allocation2 + $0x68] sm:$0xff] %v616_v29  ;;  %v600_v39 = vadd.f32 %v599_v34, %v493_v55  ;;  %v620_v40 = vadd.f32 %v619_v37, %v493_v55 }
 0x420   :  { %628 = vst [vmem:[#allocation2 + $0x30] sm:$0xff] %v598_v32  ;;  %636 = vst [vmem:[#allocation2 + $0x70] sm:$0xff] %v618_v33 }
 0x421   :  { %629 = vst [vmem:[#allocation2 + $0x38] sm:$0xff] %v600_v39  ;;  %637 = vst [vmem:[#allocation2 + $0x78] sm:$0xff] %v620_v40 }
 0x422 LB: > { %v914_v10 = vcombine.high %v1485_v46, %v1487_v47  ;;  %v913_v13 = vcombine.low %v1485_v46, %v1487_v47  ;;  %v916_v14 = vcombine.high %v1489_v48, %v1491_v49  ;;  %v915_v15 = vcombine.low %v1489_v48, %v1491_v49  ;;  %s1209_s3 = smov 64   ;;  %s908_s23 = sadd.s32 4294967295, %s1603_s0  ;;  %s1195_s19 = sphi %s1516_s19, %s649_s19   ;;  %v1191_v9 = vphi %v1514_v9, %v789_v9   ;;  %v1187_v25 = vphi %v1512_v25, %v794_v25  }
 0x423   : > { %v1208_v18 = vmov 0   ;;  %v918_v19 = vcombine.high %v1493_v50, %v1495_v2  ;;  %764 = vrot.lane.b32.xlu0 %v1187_v25, %s1209_s3  ;;  %v917_v20 = vcombine.low %v1493_v50, %v1495_v2  ;;  %v920_v24 = vcombine.high %v1497_v51, %v1499_v52  ;;  %s1554_s24 = ssub.s32 %s908_s23, %s1195_s19  ;;  %s926_s25 = sshll.u32 %s1195_s19, 4 }
 0x424   : > { %712 = vmatprep.subr.bf16.mxu0 %v914_v10  ;;  %744 = vmatprep.mubr.bf16.mxu0 %v1208_v18  ;;  %v919_v41 = vcombine.low %v1497_v51, %v1499_v52  ;;  %v668_v42 = vpack.c.bf16 %v1191_v9, %v1191_v9  ;;  %v776_v43 = vstv %s1195_s19  ;;  %v778_v45 = vstv %s1554_s24  ;;  %s927_s26 = sshll.u32 %s1554_s24, 4  ;;  %s658_s2 = scalar_lea.vmem [#allocation2], %s926_s25 }
 0x425   : > { %713 = vmatpush1.bf16.msra.mxu0 %v913_v13  ;;  %1023 = vset.pattern.permute.xlu1 %v1208_v18  ;;  %vm777_vm14 = vcmp.lt.s32.totalorder %v776_v43, %v1349_v8  ;;  %vm779_vm15 = vcmp.lt.s32.totalorder %v778_v45, %v1349_v8  ;;  %s663_s12 = scalar_lea.vmem [#allocation2], %s927_s26  ;;  %s922_s27 = sshll.u32 %s1195_s19, 3  ;;  %vm803_vm5 = vcmask 785920   ;;  %vm813_vm6 = vcmask 1048320  }
 0x426   : > { %714 = vmatprep.subr.bf16.mxu0 %v916_v14  ;;  %1024 = vset.pattern.permute.xlu0 %v1208_v18  ;;  %v795_v44 = vsel %vm777_vm14, 1, %v1208_v18  ;;  %v805_v53 = vsel %vm779_vm15, 1, %v1208_v18  ;;  %s923_s28 = sshll.u32 %s1554_s24, 3  ;;  %s802_s29 = scalar_lea.vmem [#allocation12], %s922_s27  ;;  %v780_v37 = vsel %vm131_vm0, %v776_v43, %v778_v45 }
 0x427   : > { %797 = vperm.xlu1 %1023, %v795_v44   ;;  %s812_s30 = scalar_lea.vmem [#allocation12], %s923_s28  ;;  %s649_s19 = sadd.s32 1, %s1195_s19  }
 0x428   : > { %v659_v54 = vld [vmem:[%s658_s2] sm:$0xff]  ;;  %v660_v56 = vld [vmem:[%s658_s2 + $0x8] sm:$0xff]  ;;  %p648_p6 = scmp.ge.s32.totalorder %s649_s19, %s1603_s0 }
 0x429   : > { %715 = vmatpush1.bf16.msra.mxu0 %v915_v15  ;;  %v664_v55 = vld [vmem:[%s663_s12] sm:$0xff]  ;;  %v665_v57 = vld [vmem:[%s663_s12 + $0x8] sm:$0xff] }
 0x42a   : > { %716 = vmatprep.subr.bf16.mxu0 %v918_v19  ;;  %v666_v58 = vsel %vm1342_vm1, %v659_v54, %v664_v55  ;;  %v667_v59 = vsel %vm1363_vm3, %v660_v56, %v665_v57 }
 0x42b   : > { %807 = vperm.xlu1 %1023, %v805_v53  }
 0x42d   : > { %717 = vmatpush1.bf16.msra.mxu0 %v917_v20 }
 0x42e   : > { %718 = vmatprep.subr.bf16.mxu0 %v920_v24 }
 0x431   : > { %719 = vmatpush1.bf16.msra.mxu0 %v919_v41 }
 0x434   : > { %921 = vmatmul.mubr.msk.bf16.vlgmr.msra.gmra.mrb[0].mxu0 %vm536_vm13, %v668_v42 }
 0x495   : > { %v765_v23 = vpop.permute.xlu0 %764 }
 0x4a6   : > { %v798_v29 = vpop.permute.xlu1 %797 }
 0x4a7   : > { %vm799_vm2 = vcmp.eq.s32.totalorder %v798_v29, 1 }
 0x4aa   : > { %v808_v30 = vpop.permute.xlu1 %807 }
 0x4ab   : > { %vm809_vm4 = vcmp.eq.s32.totalorder %v808_v30, 1 }
 0x507   : > { %v746_v60 = vpop.f32.mrb[0].mxu0 }
 0x508   : > { %v753_v61 = vadd.f32 %v746_v60, %v666_v58  ;;  %v748_v62 = vpop.f32.mrb[1].mxu0 }
 0x509   : > { %v754_v63 = vadd.f32 %v748_v62, %v667_v59  ;;  %v750_v0 = vpop.f32.mrb[2].mxu0 }
 0x50a   : > { %v755_v1 = vmul.f32 0.5, %v753_v61  ;;  %v751_v4 = vpop.f32.mrb[3].mxu0 }
 0x50b   : > { %v756_v5 = vmul.f32 %v754_v63, %v1355_v12 }
 0x50c   : > { %1025 = vtanh.f32 %v755_v1 }
 0x50d   : > { %1027 = vtanh.f32 %v756_v5 }
 0x516   : > { %v1026_v6 = vpop.eup %1025 }
 0x517   : > { %v1028_v11 = vpop.eup %1027  ;;  %v759_v35 = vmul.f32 0.5, %v1026_v6 }
 0x518   : > { %v760_v36 = vmul.f32 %v1028_v11, %v1355_v12 }
 0x519   : > { %v761_v38 = vadd.f32 0.5, %v759_v35 }
 0x51a   : > { %v762_v21 = vadd.f32 %v760_v36, %v130_v17 }
 0x51b   : > { %v767_v26 = vmul.f32 %v765_v23, %v761_v38 }
 0x51c   : > { %v768_v22 = vmul.f32 %v762_v21, %v761_v38 }
 0x51e   : > { %770 = vrot.lane.b32.xlu0 %v768_v22, %s1209_s3 }
 0x522   : > { %782 = vperm.xlu0 %1024, %v1349_v8  }
 0x590   : > { %v771_v27 = vpop.permute.xlu0 %770 }
 0x591   : > { %v773_v28 = vadd.f32 %v771_v27, %v767_v26 }
 0x593   : > { %1029 = vtanh.f32 %v773_v28 }
 0x59d   : > { %v1030_v31 = vpop.eup %1029 }
 0x59e   : > { %v775_v32 = vmul.f32 %v1030_v31, %v762_v21 }
 0x5a0   : > { %v800_v33 = vsel %vm799_vm2, %v775_v32, 0.0  ;;  %v810_v34 = vsel %vm809_vm4, %v775_v32, 0.0  ;;  %786 = vrot.lane.b32.xlu1 %v775_v32, %s1209_s3 }
 0x5a1   : > { %804 = vst.msk [vmem:[%s802_s29] sm:$0xff] %vm803_vm5, %v800_v33  ;;  %v783_v39 = vpop.permute.xlu0 %782 }
 0x5a2   : > { %814 = vst.msk [vmem:[%s812_s30] sm:$0xff] %vm813_vm6, %v810_v34  ;;  %vm784_vm7 = vcmp.lt.s32.totalorder %v780_v37, %v783_v39 }
 0x5a4   : > { %791 = vrot.lane.b32.xlu1 %v773_v28, %s1209_s3 }
 0x611   :  { %651 = sbr.rel (!%p648_p6) target bundleno = 1058 (0x422), region = 105 }
 0x612   : > { %v787_v40 = vpop.permute.xlu1 %786 }
 0x613   : > { %v789_v9 = vsel %vm784_vm7, %v787_v40, %v1191_v9  }
 0x616   : > { %v792_v10 = vpop.permute.xlu1 %791 }
 0x617   : > { %v794_v25 = vsel %vm784_vm7, %v792_v10, %v1187_v25  }
 0x618 PF:  { %s1210_s5 = smov [#allocation12]  }
 0x619   :  { %s820_s10 = sshll.u32 %s1210_s5, 4  ;;  %s821_s10 = int_to_ptr.vmem [resolvable:$true] %s820_s10 }
 0x61a   :  { %s1119_s14 = scalar_lea.vmem %s821_s10, 1024  ;;  %p1124_p8 = scmp.lt.s32.totalorder %s821_s10, %s821_s10 }
 0x61b   :  { %p1120_p7 = scmp.ne.s32.totalorder %s821_s10, %s1119_s14  ;;  %p1125_p9 = scmp.lt.s32.totalorder %s1119_s14, %s1119_s14 }
 0x61d   :  { %p1126_p10 = por %p1125_p9, %p1124_p8 }
 0x61f   :  { %p1127_p11 = pnand %p1126_p10, %p1120_p7 }
 0x621   :  { %1130 = shalt.err (!%p1127_p11)
}
 0x622   :  { %s1131_s8 = scalar_lea.hbm %s1612_s9, 1024 }
 0x623   :  { %p1132_p12 = scmp.ne.s32.totalorder %s1612_s9, %s1131_s8  ;;  %p1135_p13 = scmp.lt.u32.totalorder %s1131_s8, %s1612_s9 }
 0x625   :  { %p1137_p0 = pnand %p1135_p13, %p1132_p12 }
 0x627   :  { %1140 = shalt.err (!%p1137_p0)
}
 0x628   :  { %826 = dma.vmem_to_hbm [thread:$0]  %s821_s10, 1024, %s1612_s9, [#allocation6], %s1199_s21, %s1199_s21, %s1200_s22  }
 0x629   :  { %1171 = dma.done.wait [#allocation6], 1024  }
 0x62a   :  { %1172 = vsyncadd [#allocation6], 4294966272 }
 0x62b   :  { %830 = vsyncpa [#allocation5], 1 }
 0x62c   :  { %831 = vsyncpa [#allocation8], 1 }
 0x62d   :  { %832 = vsyncpa [#allocation11], 1 }
 0x62e   :  { %833 = vsyncpa [#allocation6], 1 }

</bundles_post_ra>
